<compile_context>
chip_gen: v5e
topology: v5e:2x2
jax: 0.10.0
libtpu: 0.0.40
codegen_flags: <defaults>
</compile_context>

<pallas_src>
import functools

import numpy as np
import jax
import jax.numpy as jnp
from jax.experimental import pallas as pl
from jax.experimental.pallas import tpu as pltpu


_MAX_BATCH_PACK = 16   # bounds static unrolling (and vreg pressure) in the kernel


def _default_max_block_bytes():
    """Chip-aware block budget (blocks are double-buffered for in AND out)."""
    try:
        kind = jax.devices()[0].device_kind.lower()
    except Exception:
        kind = ""
    if "v5 lite" in kind or "v5e" in kind or "v5lite" in kind:
        return 3 << 20   # 4 x 3 MiB = 12 MiB < 16 MiB default scoped VMEM on v5e
    if "v7" in kind or "tpu7" in kind or kind.endswith("7x"):
        return 6 << 20   # v7x: 3.2 TB/s HBM -> bigger blocks; 24 MiB < 32 MiB scoped
    return 4 << 20       # v6e & friends: ~85% of roofline already at 4 MiB


def _choose_tiling(B, F, T, itemsize, max_block_bytes):
    """Pick (bt, ff, tt) so one block is ~block-budget sized and lane-dense.

    Constraints: tt is a multiple of 128 or == T; ff is a multiple of 8 or == F.
    Partial last blocks on any axis are fine (Pallas pads reads / drops writes).
    """
    bt, ff, tt = 1, F, T
    row_bytes = F * T * itemsize
    if row_bytes <= max_block_bytes:
        # Pack several batch rows per block (no divisibility requirement).
        bt = max(1, min(B, _MAX_BATCH_PACK, max_block_bytes // row_bytes))
    else:
        if T > 128:
            tt = (max_block_bytes // (F * itemsize)) // 128 * 128
            tt = min(max(128, tt), T)
        if F * tt * itemsize > max_block_bytes and F > 8:
            # Also tile the freq axis so a single slab can never blow VMEM.
            ff = (max_block_bytes // (tt * itemsize)) // 8 * 8
            ff = min(max(8, ff), F)

    def _grid(bt, ff, tt):
        return (pl.cdiv(B, bt), pl.cdiv(F, ff), pl.cdiv(T, tt))

    # v7x has 2 TensorCores: make sure the "parallel" grid has >= 2 steps so
    # both cores get work (a 1-step grid leaves one TC idle).
    gb, gf, gt = _grid(bt, ff, tt)
    if gb * gf * gt == 1:
        if B >= 2:
            bt = pl.cdiv(B, 2)
        elif T >= 256:
            tt = pl.cdiv(pl.cdiv(T, 2), 128) * 128   # multiple of 128, < T
        gb, gf, gt = _grid(bt, ff, tt)
    return bt, ff, tt, (gb, gf, gt)


def _specaug_kernel(ts_ref, te_ref, fs_ref, fe_ref, mv_ref, x_ref, o_ref, *,
                    bt, ff, tt, n_time_masks, n_freq_masks, batch):
    """Apply all time + freq interval masks for one (batch, freq, time) block."""
    bb = pl.program_id(0)          # batch-block index
    fb = pl.program_id(1)          # freq-block index
    tb = pl.program_id(2)          # time-block index
    t0 = tb * tt
    f0 = fb * ff

    # 1-D iotas: time compares on (1, tt), freq compares on (ff, 1); the OR of
    # the two broadcasts to (ff, tt) only once, saving VPU work and vregs.
    t_idx = jax.lax.broadcasted_iota(jnp.int32, (1, tt), 1) + t0
    f_idx = jax.lax.broadcasted_iota(jnp.int32, (ff, 1), 0) + f0

    # Hoisted out of the batch-pack loop (JAX does not CSE the cast/broadcast).
    fill = mv_ref[0].astype(x_ref.dtype)   # global mean (or 0.0)

    for lb in range(bt):                    # static unroll over packed rows
        # Clamp so padded rows of a partial batch block never index SMEM OOB;
        # their outputs land in the block's padded region and are discarded.
        b = jnp.minimum(bb * bt + lb, batch - 1)
        t_mask = jnp.zeros((1, tt), jnp.bool_)
        for m in range(n_time_masks):
            s = ts_ref[b * n_time_masks + m]
            e = te_ref[b * n_time_masks + m]
            t_mask = t_mask | ((t_idx >= s) & (t_idx < e))
        f_mask = jnp.zeros((ff, 1), jnp.bool_)
        for m in range(n_freq_masks):
            s = fs_ref[b * n_freq_masks + m]
            e = fe_ref[b * n_freq_masks + m]
            f_mask = f_mask | ((f_idx >= s) & (f_idx < e))
        x = x_ref[lb]                       # (ff, tt), input dtype
        o_ref[lb] = jnp.where(t_mask | f_mask, fill, x)


class SpecAugment:
    """JAX/Pallas port of cosyvoice SpecAugment (torchaudio semantics)."""

    def __init__(self, n_time_masks, time_mask_ratio, n_freq_masks,
                 freq_mask_ratio, iid_masks=True, p=1.0, zero_masking=False,
                 max_block_bytes=None, donate_specgram=False):
        self.n_time_masks = n_time_masks
        self.time_mask_ratio = time_mask_ratio
        self.n_freq_masks = n_freq_masks
        self.freq_mask_ratio = freq_mask_ratio
        self.iid_masks = iid_masks
        self.p = p
        self.zero_masking = zero_masking
        self.max_block_bytes = (max_block_bytes if max_block_bytes is not None
                                else _default_max_block_bytes())
        # Only alias x -> out when the caller actually donates specgram;
        # otherwise XLA inserts a defensive full copy, erasing the win.
        self.donate_specgram = donate_specgram

    # torchaudio mask_along_axis_iid semantics:
    #   mask_param = int(axis_size * ratio); if p < 1: cap at int(axis_size * p)
    #   value     = rand * mask_param
    #   min_value = rand * (size - value)
    #   start = long(min_value); end = start + long(value)
    def _effective_param(self, n_masks, axis_size, ratio):
        if n_masks == 0:
            return 0
        mask_param = int(axis_size * ratio)
        if self.p < 1.0:
            mask_param = min(mask_param, int(axis_size * self.p))
        return mask_param

    def _sample(self, key, batch, n_masks, axis_size, mask_ratio):
        if n_masks == 0:
            z = jnp.zeros((batch, 0), jnp.int32)
            return z, z
        mask_param = self._effective_param(n_masks, axis_size, mask_ratio)
        if mask_param < 1:                      # torchaudio: no masking
            z = jnp.zeros((batch, n_masks), jnp.int32)
            return z, z
        n_rand = batch if self.iid_masks else 1
        k1, k2 = jax.random.split(key)
        value = jax.random.uniform(k1, (n_rand, n_masks), jnp.float32) * mask_param
        min_value = jax.random.uniform(k2, (n_rand, n_masks), jnp.float32) * (axis_size - value)
        s = min_value.astype(jnp.int32)
        e = s + value.astype(jnp.int32)
        s = jnp.broadcast_to(s, (batch, n_masks))
        e = jnp.broadcast_to(e, (batch, n_masks))
        return s, e

    def __call__(self, key, specgram):
        assert specgram.ndim == 3, "expects (B, F, T); torch channel dim == 1"
        B, F, T = specgram.shape
        x = specgram                            # keep input dtype end-to-end
        itemsize = x.dtype.itemsize

        # ---- host-side RNG glue (equivalent of the torch.rand calls) ----
        k_t, k_f = jax.random.split(key)
        ts2, te2 = self._sample(k_t, B, self.n_time_masks, T, self.time_mask_ratio)
        fs2, fe2 = self._sample(k_f, B, self.n_freq_masks, F, self.freq_mask_ratio)

        # ---- static early-out: degenerate config is a no-op (free) ----
        t_param = self._effective_param(self.n_time_masks, T, self.time_mask_ratio)
        f_param = self._effective_param(self.n_freq_masks, F, self.freq_mask_ratio)
        if t_param < 1 and f_param < 1:
            return specgram, (ts2, te2, fs2, fe2, jnp.zeros((1,), jnp.float32))

        bt, ff, tt, grid = _choose_tiling(B, F, T, itemsize, self.max_block_bytes)

        # ---- mean fill value: plain XLA reduction (HBM-roofline, fusible),
        #      skipped entirely for zero_masking ----
        if self.zero_masking:
            mv = jnp.zeros((1,), jnp.float32)
        else:
            mv = (jnp.sum(x, dtype=jnp.float32) / float(B * F * T)).reshape((1,))

        # Flatten (B, n_masks) -> 1-D b-major SMEM arrays (avoid 2-D SMEM pad).
        def _flat(a):
            return a.reshape(-1).astype(jnp.int32) if a.size else jnp.zeros((1,), jnp.int32)

        ts, te, fs, fe = _flat(ts2), _flat(te2), _flat(fs2), _flat(fe2)

        kernel = functools.partial(
            _specaug_kernel, bt=bt, ff=ff, tt=tt,
            n_time_masks=self.n_time_masks, n_freq_masks=self.n_freq_masks,
            batch=B)

        # x is operand index 5 (after the 5 scalar-prefetch operands).
        aliases = {5: 0} if self.donate_specgram else {}

        out = pl.pallas_call(
            kernel,
            out_shape=jax.ShapeDtypeStruct((B, F, T), x.dtype),
            grid_spec=pltpu.PrefetchScalarGridSpec(
                num_scalar_prefetch=5,
                grid=grid,
                in_specs=[pl.BlockSpec((bt, ff, tt),
                                       lambda bb, fb, tb, *_: (bb, fb, tb))],
                out_specs=pl.BlockSpec((bt, ff, tt),
                                       lambda bb, fb, tb, *_: (bb, fb, tb))),
            compiler_params=pltpu.CompilerParams(
                dimension_semantics=("parallel", "parallel", "parallel")),
            input_output_aliases=aliases,
        )(ts, te, fs, fe, mv, x)

        return out, (ts2, te2, fs2, fe2, mv)


def _reference(x, ts, te, fs, fe, mask_value):
    """Pure-JAX reference with identical (start, end) samples."""
    B, F, T = x.shape
    t_idx = jnp.arange(T)[None, None, :]
    f_idx = jnp.arange(F)[None, :, None]
    mask = jnp.zeros((B, F, T), dtype=bool)
    for m in range(ts.shape[1]):
        mask = mask | ((t_idx >= ts[:, m, None, None]) & (t_idx < te[:, m, None, None]))
    for m in range(fs.shape[1]):
        mask = mask | ((f_idx >= fs[:, m, None, None]) & (f_idx < fe[:, m, None, None]))
    return jnp.where(mask, mask_value[0].astype(x.dtype), x)


if __name__ == "__main__":
    key = jax.random.PRNGKey(0)
    k_d1, k_m1, k_d2, k_m2, k_d3, k_m3 = jax.random.split(key, 6)

    # --- test 1: f32, batch-packed blocks with a partial batch block
    #             (B=3, bt=2 -> grid_b=2, exercises the SMEM index clamp) ---
    B, F, T = 3, 16, 128
    x1 = jax.random.normal(k_d1, (B, F, T), dtype=jnp.float32)
    aug1 = SpecAugment(n_time_masks=2, time_mask_ratio=0.2,
                       n_freq_masks=2, freq_mask_ratio=0.25,
                       iid_masks=True, p=1.0, zero_masking=False)
    out1, (ts1, te1, fs1, fe1, mv1) = aug1(k_m1, x1)
    out1 = jax.block_until_ready(out1)
    assert out1.shape == x1.shape and out1.dtype == x1.dtype
    ref1 = _reference(x1, ts1, te1, fs1, fe1, mv1)
    np.testing.assert_array_equal(np.asarray(out1), np.asarray(ref1))

    # --- test 2: bf16 input, time-tiled blocks with a partial last time block ---
    B2, F2, T2 = 2, 16, 384
    x2 = jax.random.normal(k_d2, (B2, F2, T2), dtype=jnp.float32).astype(jnp.bfloat16)
    aug2 = SpecAugment(n_time_masks=1, time_mask_ratio=0.3,
                       n_freq_masks=1, freq_mask_ratio=0.3,
                       iid_masks=True, p=1.0, zero_masking=False,
                       max_block_bytes=8 * 1024)   # force time tiling (tt=256)
    out2, (ts2b, te2b, fs2b, fe2b, mv2) = aug2(k_m2, x2)
    out2 = jax.block_until_ready(out2)
    assert out2.shape == x2.shape and out2.dtype == x2.dtype
    ref2 = _reference(x2, ts2b, te2b, fs2b, fe2b, mv2)
    np.testing.assert_array_equal(np.asarray(out2), np.asarray(ref2))

    # --- test 3: freq-axis tiling with a partial last freq block (ff=8, F=20) ---
    B3, F3, T3 = 1, 20, 128
    x3 = jax.random.normal(k_d3, (B3, F3, T3), dtype=jnp.float32)
    aug3 = SpecAugment(n_time_masks=1, time_mask_ratio=0.25,
                       n_freq_masks=2, freq_mask_ratio=0.3,
                       iid_masks=True, p=1.0, zero_masking=False,
                       max_block_bytes=4 * 1024)   # force freq tiling
    out3, (ts3, te3, fs3, fe3, mv3) = aug3(k_m3, x3)
    out3 = jax.block_until_ready(out3)
    ref3 = _reference(x3, ts3, te3, fs3, fe3, mv3)
    np.testing.assert_array_equal(np.asarray(out3), np.asarray(ref3))

    # --- test 4: zero_masking path (no mean reduction at all) ---
    aug4 = SpecAugment(n_time_masks=1, time_mask_ratio=0.3,
                       n_freq_masks=1, freq_mask_ratio=0.3,
                       iid_masks=True, p=1.0, zero_masking=True)
    out4, (ts4, te4, fs4, fe4, mv4) = aug4(k_m1, x1)
    out4 = jax.block_until_ready(out4)
    ref4 = _reference(x1, ts4, te4, fs4, fe4, mv4)
    np.testing.assert_array_equal(np.asarray(out4), np.asarray(ref4))

    # --- test 5: static early-out (effective mask_param < 1 on both axes) ---
    aug5 = SpecAugment(n_time_masks=1, time_mask_ratio=0.005,
                       n_freq_masks=1, freq_mask_ratio=0.04,
                       iid_masks=True, p=1.0, zero_masking=False)
    out5, _ = aug5(k_m1, x1)
    out5 = jax.block_until_ready(out5)
    np.testing.assert_array_equal(np.asarray(out5), np.asarray(x1))

    print("KERNEL_OK")
</pallas_src>

<mosaic_0001>
module attributes {stable_mosaic.version = 11 : i64} {
  func.func @_specaug_kernel(%arg0: i32, %arg1: i32, %arg2: i32, %arg3: memref<6xi32, #tpu.memory_space<smem>>, %arg4: memref<6xi32, #tpu.memory_space<smem>>, %arg5: memref<6xi32, #tpu.memory_space<smem>>, %arg6: memref<6xi32, #tpu.memory_space<smem>>, %arg7: memref<1xf32, #tpu.memory_space<smem>>, %arg8: memref<2x16x128xf32, #tpu.memory_space<vmem>>, %arg9: memref<2x16x128xf32, #tpu.memory_space<vmem>>) attributes {dimension_semantics = [#tpu.dimension_semantics<parallel>, #tpu.dimension_semantics<parallel>, #tpu.dimension_semantics<parallel>], iteration_bounds = array<i64: 2, 1, 1>, scalar_prefetch = 5 : i64, scratch_operands = 0 : i64, tpu.core_type = #tpu.core_type<tc>, window_params = [{transform_indices = @transform_0, window_bounds = array<i64: 2, 16, 128>}, {transform_indices = @transform_1, window_bounds = array<i64: 2, 16, 128>}]} {
    %c128_i32 = arith.constant 128 : i32
    %0 = arith.muli %arg2, %c128_i32 : i32
    %c16_i32 = arith.constant 16 : i32
    %1 = arith.muli %arg1, %c16_i32 : i32
    %2 = tpu.iota {dimensions = array<i32: 1>} : vector<1x128xi32>
    %3 = vector.broadcast %0 : i32 to vector<1x128xi32>
    %4 = arith.addi %2, %3 : vector<1x128xi32>
    %5 = tpu.iota {dimensions = array<i32: 0>} : vector<16x1xi32>
    %6 = vector.broadcast %1 : i32 to vector<16x1xi32>
    %7 = arith.addi %5, %6 : vector<16x1xi32>
    %c0 = arith.constant 0 : index
    %8 = memref.load %arg7[%c0] : memref<1xf32, #tpu.memory_space<smem>>
    %c2_i32 = arith.constant 2 : i32
    %9 = arith.muli %arg0, %c2_i32 : i32
    %c0_i32 = arith.constant 0 : i32
    %10 = arith.addi %9, %c0_i32 : i32
    %c2_i32_0 = arith.constant 2 : i32
    %11 = arith.minsi %10, %c2_i32_0 : i32
    %false = arith.constant false
    %12 = vector.broadcast %false : i1 to vector<1x128xi1>
    %c2_i32_1 = arith.constant 2 : i32
    %13 = arith.muli %11, %c2_i32_1 : i32
    %c0_i32_2 = arith.constant 0 : i32
    %14 = arith.addi %13, %c0_i32_2 : i32
    %15 = arith.index_cast %14 : i32 to index
    %16 = memref.load %arg3[%15] : memref<6xi32, #tpu.memory_space<smem>>
    %c2_i32_3 = arith.constant 2 : i32
    %17 = arith.muli %11, %c2_i32_3 : i32
    %c0_i32_4 = arith.constant 0 : i32
    %18 = arith.addi %17, %c0_i32_4 : i32
    %19 = arith.index_cast %18 : i32 to index
    %20 = memref.load %arg4[%19] : memref<6xi32, #tpu.memory_space<smem>>
    %21 = vector.broadcast %16 : i32 to vector<1x128xi32>
    %22 = arith.cmpi sge, %4, %21 : vector<1x128xi32>
    %23 = vector.broadcast %20 : i32 to vector<1x128xi32>
    %24 = arith.cmpi slt, %4, %23 : vector<1x128xi32>
    %25 = arith.andi %22, %24 : vector<1x128xi1>
    %26 = arith.ori %12, %25 : vector<1x128xi1>
    %c2_i32_5 = arith.constant 2 : i32
    %27 = arith.muli %11, %c2_i32_5 : i32
    %c1_i32 = arith.constant 1 : i32
    %28 = arith.addi %27, %c1_i32 : i32
    %29 = arith.index_cast %28 : i32 to index
    %30 = memref.load %arg3[%29] : memref<6xi32, #tpu.memory_space<smem>>
    %c2_i32_6 = arith.constant 2 : i32
    %31 = arith.muli %11, %c2_i32_6 : i32
    %c1_i32_7 = arith.constant 1 : i32
    %32 = arith.addi %31, %c1_i32_7 : i32
    %33 = arith.index_cast %32 : i32 to index
    %34 = memref.load %arg4[%33] : memref<6xi32, #tpu.memory_space<smem>>
    %35 = vector.broadcast %30 : i32 to vector<1x128xi32>
    %36 = arith.cmpi sge, %4, %35 : vector<1x128xi32>
    %37 = vector.broadcast %34 : i32 to vector<1x128xi32>
    %38 = arith.cmpi slt, %4, %37 : vector<1x128xi32>
    %39 = arith.andi %36, %38 : vector<1x128xi1>
    %40 = arith.ori %26, %39 : vector<1x128xi1>
    %false_8 = arith.constant false
    %41 = vector.broadcast %false_8 : i1 to vector<16x1xi1>
    %c2_i32_9 = arith.constant 2 : i32
    %42 = arith.muli %11, %c2_i32_9 : i32
    %c0_i32_10 = arith.constant 0 : i32
    %43 = arith.addi %42, %c0_i32_10 : i32
    %44 = arith.index_cast %43 : i32 to index
    %45 = memref.load %arg5[%44] : memref<6xi32, #tpu.memory_space<smem>>
    %c2_i32_11 = arith.constant 2 : i32
    %46 = arith.muli %11, %c2_i32_11 : i32
    %c0_i32_12 = arith.constant 0 : i32
    %47 = arith.addi %46, %c0_i32_12 : i32
    %48 = arith.index_cast %47 : i32 to index
    %49 = memref.load %arg6[%48] : memref<6xi32, #tpu.memory_space<smem>>
    %50 = vector.broadcast %45 : i32 to vector<16x1xi32>
    %51 = arith.cmpi sge, %7, %50 : vector<16x1xi32>
    %52 = vector.broadcast %49 : i32 to vector<16x1xi32>
    %53 = arith.cmpi slt, %7, %52 : vector<16x1xi32>
    %54 = arith.andi %51, %53 : vector<16x1xi1>
    %55 = arith.ori %41, %54 : vector<16x1xi1>
    %c2_i32_13 = arith.constant 2 : i32
    %56 = arith.muli %11, %c2_i32_13 : i32
    %c1_i32_14 = arith.constant 1 : i32
    %57 = arith.addi %56, %c1_i32_14 : i32
    %58 = arith.index_cast %57 : i32 to index
    %59 = memref.load %arg5[%58] : memref<6xi32, #tpu.memory_space<smem>>
    %c2_i32_15 = arith.constant 2 : i32
    %60 = arith.muli %11, %c2_i32_15 : i32
    %c1_i32_16 = arith.constant 1 : i32
    %61 = arith.addi %60, %c1_i32_16 : i32
    %62 = arith.index_cast %61 : i32 to index
    %63 = memref.load %arg6[%62] : memref<6xi32, #tpu.memory_space<smem>>
    %64 = vector.broadcast %59 : i32 to vector<16x1xi32>
    %65 = arith.cmpi sge, %7, %64 : vector<16x1xi32>
    %66 = vector.broadcast %63 : i32 to vector<16x1xi32>
    %67 = arith.cmpi slt, %7, %66 : vector<16x1xi32>
    %68 = arith.andi %65, %67 : vector<16x1xi1>
    %69 = arith.ori %55, %68 : vector<16x1xi1>
    %c0_17 = arith.constant 0 : index
    %c0_18 = arith.constant 0 : index
    %c0_19 = arith.constant 0 : index
    %70 = vector.load %arg8[%c0_17, %c0_18, %c0_19] : memref<2x16x128xf32, #tpu.memory_space<vmem>>, vector<1x16x128xf32>
    %71 = vector.shape_cast %70 : vector<1x16x128xf32> to vector<16x128xf32>
    %72 = vector.broadcast %40 : vector<1x128xi1> to vector<16x128xi1>
    %73 = vector.broadcast %69 : vector<16x1xi1> to vector<16x128xi1>
    %74 = arith.ori %72, %73 : vector<16x128xi1>
    %75 = vector.broadcast %8 : f32 to vector<16x128xf32>
    %76 = arith.select %74, %75, %71 : vector<16x128xi1>, vector<16x128xf32>
    %c0_20 = arith.constant 0 : index
    %c0_21 = arith.constant 0 : index
    %c0_22 = arith.constant 0 : index
    %77 = vector.load %arg9[%c0_20, %c0_21, %c0_22] : memref<2x16x128xf32, #tpu.memory_space<vmem>>, vector<1x16x128xf32>
    %78 = vector.shape_cast %77 : vector<1x16x128xf32> to vector<16x128xf32>
    %79 = vector.shape_cast %76 : vector<16x128xf32> to vector<1x16x128xf32>
    tpu.vector_store %arg9[%c0_20, %c0_21, %c0_22], %79 {strides = array<i32>} : memref<2x16x128xf32, #tpu.memory_space<vmem>>, vector<1x16x128xf32>,
    %c2_i32_23 = arith.constant 2 : i32
    %80 = arith.muli %arg0, %c2_i32_23 : i32
    %c1_i32_24 = arith.constant 1 : i32
    %81 = arith.addi %80, %c1_i32_24 : i32
    %c2_i32_25 = arith.constant 2 : i32
    %82 = arith.minsi %81, %c2_i32_25 : i32
    %false_26 = arith.constant false
    %83 = vector.broadcast %false_26 : i1 to vector<1x128xi1>
    %c2_i32_27 = arith.constant 2 : i32
    %84 = arith.muli %82, %c2_i32_27 : i32
    %c0_i32_28 = arith.constant 0 : i32
    %85 = arith.addi %84, %c0_i32_28 : i32
    %86 = arith.index_cast %85 : i32 to index
    %87 = memref.load %arg3[%86] : memref<6xi32, #tpu.memory_space<smem>>
    %c2_i32_29 = arith.constant 2 : i32
    %88 = arith.muli %82, %c2_i32_29 : i32
    %c0_i32_30 = arith.constant 0 : i32
    %89 = arith.addi %88, %c0_i32_30 : i32
    %90 = arith.index_cast %89 : i32 to index
    %91 = memref.load %arg4[%90] : memref<6xi32, #tpu.memory_space<smem>>
    %92 = vector.broadcast %87 : i32 to vector<1x128xi32>
    %93 = arith.cmpi sge, %4, %92 : vector<1x128xi32>
    %94 = vector.broadcast %91 : i32 to vector<1x128xi32>
    %95 = arith.cmpi slt, %4, %94 : vector<1x128xi32>
    %96 = arith.andi %93, %95 : vector<1x128xi1>
    %97 = arith.ori %83, %96 : vector<1x128xi1>
    %c2_i32_31 = arith.constant 2 : i32
    %98 = arith.muli %82, %c2_i32_31 : i32
    %c1_i32_32 = arith.constant 1 : i32
    %99 = arith.addi %98, %c1_i32_32 : i32
    %100 = arith.index_cast %99 : i32 to index
    %101 = memref.load %arg3[%100] : memref<6xi32, #tpu.memory_space<smem>>
    %c2_i32_33 = arith.constant 2 : i32
    %102 = arith.muli %82, %c2_i32_33 : i32
    %c1_i32_34 = arith.constant 1 : i32
    %103 = arith.addi %102, %c1_i32_34 : i32
    %104 = arith.index_cast %103 : i32 to index
    %105 = memref.load %arg4[%104] : memref<6xi32, #tpu.memory_space<smem>>
    %106 = vector.broadcast %101 : i32 to vector<1x128xi32>
    %107 = arith.cmpi sge, %4, %106 : vector<1x128xi32>
    %108 = vector.broadcast %105 : i32 to vector<1x128xi32>
    %109 = arith.cmpi slt, %4, %108 : vector<1x128xi32>
    %110 = arith.andi %107, %109 : vector<1x128xi1>
    %111 = arith.ori %97, %110 : vector<1x128xi1>
    %false_35 = arith.constant false
    %112 = vector.broadcast %false_35 : i1 to vector<16x1xi1>
    %c2_i32_36 = arith.constant 2 : i32
    %113 = arith.muli %82, %c2_i32_36 : i32
    %c0_i32_37 = arith.constant 0 : i32
    %114 = arith.addi %113, %c0_i32_37 : i32
    %115 = arith.index_cast %114 : i32 to index
    %116 = memref.load %arg5[%115] : memref<6xi32, #tpu.memory_space<smem>>
    %c2_i32_38 = arith.constant 2 : i32
    %117 = arith.muli %82, %c2_i32_38 : i32
    %c0_i32_39 = arith.constant 0 : i32
    %118 = arith.addi %117, %c0_i32_39 : i32
    %119 = arith.index_cast %118 : i32 to index
    %120 = memref.load %arg6[%119] : memref<6xi32, #tpu.memory_space<smem>>
    %121 = vector.broadcast %116 : i32 to vector<16x1xi32>
    %122 = arith.cmpi sge, %7, %121 : vector<16x1xi32>
    %123 = vector.broadcast %120 : i32 to vector<16x1xi32>
    %124 = arith.cmpi slt, %7, %123 : vector<16x1xi32>
    %125 = arith.andi %122, %124 : vector<16x1xi1>
    %126 = arith.ori %112, %125 : vector<16x1xi1>
    %c2_i32_40 = arith.constant 2 : i32
    %127 = arith.muli %82, %c2_i32_40 : i32
    %c1_i32_41 = arith.constant 1 : i32
    %128 = arith.addi %127, %c1_i32_41 : i32
    %129 = arith.index_cast %128 : i32 to index
    %130 = memref.load %arg5[%129] : memref<6xi32, #tpu.memory_space<smem>>
    %c2_i32_42 = arith.constant 2 : i32
    %131 = arith.muli %82, %c2_i32_42 : i32
    %c1_i32_43 = arith.constant 1 : i32
    %132 = arith.addi %131, %c1_i32_43 : i32
    %133 = arith.index_cast %132 : i32 to index
    %134 = memref.load %arg6[%133] : memref<6xi32, #tpu.memory_space<smem>>
    %135 = vector.broadcast %130 : i32 to vector<16x1xi32>
    %136 = arith.cmpi sge, %7, %135 : vector<16x1xi32>
    %137 = vector.broadcast %134 : i32 to vector<16x1xi32>
    %138 = arith.cmpi slt, %7, %137 : vector<16x1xi32>
    %139 = arith.andi %136, %138 : vector<16x1xi1>
    %140 = arith.ori %126, %139 : vector<16x1xi1>
    %c1 = arith.constant 1 : index
    %c0_44 = arith.constant 0 : index
    %c0_45 = arith.constant 0 : index
    %141 = vector.load %arg8[%c1, %c0_44, %c0_45] : memref<2x16x128xf32, #tpu.memory_space<vmem>>, vector<1x16x128xf32>
    %142 = vector.shape_cast %141 : vector<1x16x128xf32> to vector<16x128xf32>
    %143 = vector.broadcast %111 : vector<1x128xi1> to vector<16x128xi1>
    %144 = vector.broadcast %140 : vector<16x1xi1> to vector<16x128xi1>
    %145 = arith.ori %143, %144 : vector<16x128xi1>
    %146 = vector.broadcast %8 : f32 to vector<16x128xf32>
    %147 = arith.select %145, %146, %142 : vector<16x128xi1>, vector<16x128xf32>
    %c1_46 = arith.constant 1 : index
    %c0_47 = arith.constant 0 : index
    %c0_48 = arith.constant 0 : index
    %148 = vector.load %arg9[%c1_46, %c0_47, %c0_48] : memref<2x16x128xf32, #tpu.memory_space<vmem>>, vector<1x16x128xf32>
    %149 = vector.shape_cast %148 : vector<1x16x128xf32> to vector<16x128xf32>
    %150 = vector.shape_cast %147 : vector<16x128xf32> to vector<1x16x128xf32>
    tpu.vector_store %arg9[%c1_46, %c0_47, %c0_48], %150 {strides = array<i32>} : memref<2x16x128xf32, #tpu.memory_space<vmem>>, vector<1x16x128xf32>,
    return
  }
  func.func @transform_0(%arg0: i32, %arg1: i32, %arg2: i32, %arg3: memref<6xi32, #tpu.memory_space<smem>>, %arg4: memref<6xi32, #tpu.memory_space<smem>>, %arg5: memref<6xi32, #tpu.memory_space<smem>>, %arg6: memref<6xi32, #tpu.memory_space<smem>>, %arg7: memref<1xf32, #tpu.memory_space<smem>>) -> (i32, i32, i32) {
    %c0_i32 = arith.constant 0 : i32
    return %arg0, %arg1, %arg2 : i32, i32, i32
  }
  func.func @transform_1(%arg0: i32, %arg1: i32, %arg2: i32, %arg3: memref<6xi32, #tpu.memory_space<smem>>, %arg4: memref<6xi32, #tpu.memory_space<smem>>, %arg5: memref<6xi32, #tpu.memory_space<smem>>, %arg6: memref<6xi32, #tpu.memory_space<smem>>, %arg7: memref<1xf32, #tpu.memory_space<smem>>) -> (i32, i32, i32) {
    %c0_i32 = arith.constant 0 : i32
    return %arg0, %arg1, %arg2 : i32, i32, i32
  }
}

</mosaic_0001>

<bundles_post_ra>
// kernel: tpu_custom_call.1
= control target key start
LH: loop header
LB: loop body
LE: loop exit
PB: predicated region body
PF: predicated region fallthrough
CT: control target
= control target key end

     0   :  { %s762_s27 = smov [#allocation3]   ;;  %s763_s28 = smov [#allocation4]   ;;  %s1171_s0 = inlined_call_operand.vmem [shape: s32[6], index: 0, kind: input, shape index: {}]   ;;  %s1172_s5 = inlined_call_operand.hbm [shape: f32[3,16,128], index: 5, kind: input, shape index: {}]   ;;  %s1173_s6 = inlined_call_operand.hbm [shape: f32[3,16,128], index: 6, kind: output, shape index: {}]   ;;  %s1174_s1 = inlined_call_operand.vmem [shape: s32[6], index: 1, kind: input, shape index: {}]   ;;  %s1175_s2 = inlined_call_operand.vmem [shape: s32[6], index: 2, kind: input, shape index: {}]   ;;  %s1176_s3 = inlined_call_operand.vmem [shape: s32[6], index: 3, kind: input, shape index: {}]   ;;  %s1177_s4 = inlined_call_operand.<no memory space> [shape: f32[1], index: 4, kind: input, shape index: {}]  }
   0x1   :  { %s12_s23 = sshll.u32 %s1171_s0, 4  ;;  %s17_s26 = sshll.u32 %s1174_s1, 4  ;;  %s13_s23 = int_to_ptr.vmem [resolvable:$true] %s12_s23  ;;  %s18_s26 = int_to_ptr.vmem [resolvable:$true] %s17_s26 }
   0x2   :  { %15 = dma.vmem_to_smem %s13_s23, 16, %s762_s27, [#allocation2] }
   0x3   :  { %20 = dma.vmem_to_smem %s18_s26, 16, %s763_s28, [#allocation2] }
   0x4   :  { %s22_s7 = sshll.u32 %s1175_s2, 4  ;;  %s27_s10 = sshll.u32 %s1176_s3, 4  ;;  %s23_s7 = int_to_ptr.vmem [resolvable:$true] %s22_s7  ;;  %s28_s10 = int_to_ptr.vmem [resolvable:$true] %s27_s10 }
   0x5   :  { %s764_s0 = smov [#allocation5]   ;;  %s765_s11 = smov [#allocation6]  }
   0x6   :  { %25 = dma.vmem_to_smem %s23_s7, 16, %s764_s0, [#allocation2] }
   0x7   :  { %30 = dma.vmem_to_smem %s28_s10, 16, %s765_s11, [#allocation2] }
   0x8   :  { %31 = sst [smem:[#allocation7]] %s1177_s4 }
   0x9   :  { %728 = dma.done.wait [#allocation2], 64 }
   0xa   :  { %729 = vsyncadd [#allocation2], 4294967232 }
   0xb   :  { %34 = sfence }
   0xc   :  { %35 = vsyncpa [#allocation9], 0 }
   0xd   :  { %37 = vsyncpa [#allocation9 + $0x1], 0 }
   0xe   :  { %38 = vsyncpa [#allocation10], 0 }
   0xf   :  { %40 = vsyncpa [#allocation10 + $0x1], 0  ;;  %s822_s2 = smov 0   ;;  %s824_s13 = smov 0  }
  0x10   :  { %s826_s3 = smov 0   ;;  %s828_s14 = smov 0  }
  0x11   :  { %s830_s15 = smov 0   ;;  %s832_s16 = smov 0  }
  0x12 LB: > { %s469_s4 = sadd.s32 4294967295, %s760_s16   ;;  %s470_s17 = sadd.s32 4294967294, %s760_s16   ;;  %s760_s16 = sphi %s832_s16, %s46_s16   ;;  %s756_s15 = sphi %s830_s15, %s1217_s15   ;;  %s752_s14 = sphi %s828_s14, %s1216_s14   ;;  %s748_s3 = sphi %s826_s3, %s1215_s3   ;;  %s744_s13 = sphi %s824_s13, %s1214_s13   ;;  %s740_s2 = sphi %s822_s2, %s1213_s2  }
  0x13   : > { %s65_s18 = sadd.s32 1, %s756_s15  ;;  %s76_s19 = sadd.s32 1, %s748_s3 }
  0x14   : > { %p67_p0 = scmp.ge.s32.totalorder %s65_s18, 2  ;;  %p83_p1 = scmp.ne.s32.totalorder %s748_s3, %s744_s13 }
  0x15   : > { %p84_p2 = scmp.eq.s32.totalorder %s760_s16, 0  ;;  %p89_p3 = scmp.ne.s32.totalorder %s744_s13, %s740_s2 }
  0x16   : > { %s1219_s18 = smov (%p67_p0, %s65_s18), 0  ;;  %p90_p5 = scmp.eq.s32.totalorder %s469_s4, 0 }
  0x17   : > { %p85_p4 = por %p84_p2, %p83_p1  ;;  %s69_s20 = ssub.s32 %s756_s15, %s1219_s18 }
  0x18   : > { %p117_p6 = scmp.eq.s32.totalorder %s469_s4, 1  ;;  %p74_p7 = scmp.eq.s32.totalorder %s69_s20, 0 }
  0x19   : > { %p865_p8 = por %p90_p5, %p89_p3  ;;  %p123_p10 = scmp.eq.s32.totalorder %s470_s17, 1 }
  0x1a   : > { %p869_p9 = por %p117_p6, %p83_p1  ;;  %p472_p12 = scmp.ge.s32.totalorder %s760_s16, 2 }
  0x1b   : > { %s874_s23 = scalar_select %p74_p7, %s748_s3, %s76_s19  }
  0x1c   : > { %p876_p11 = por %p123_p10, %p89_p3  ;;  %139 = sbr.rel (%p472_p12) target bundleno = 69 (0x45), region = 16 }
  0x21   : > { %142 = sbr.rel (!%p85_p4) target bundleno = 69 (0x45), region = 20  ;;  %s143_s25 = sand.u32 (%p85_p4), 1, %s748_s3  }
  0x22   : > { %s474_s26 = sshll.u32 (%p85_p4), %s756_s15, 1  ;;  %s473_s27 = sshll.u32 (%p85_p4), %s143_s25, 5 }
  0x23   : > { %s150_s28 = ssub.s32 (%p85_p4), 3, %s474_s26  ;;  %s888_s8 = scalar_lea.sflag (%p85_p4), [#allocation9], %s143_s25 }
  0x24   : > { %p151_p13 = scmp.lt.s32.totalorder (%p85_p4), %s150_s28, 2  ;;  %s147_s9 = scalar_lea.vmem (%p85_p4), [#allocation8], %s473_s27 }
  0x26   : > { %s1221_s28 = smov (!%p151_p13, %s150_s28), 2 }
  0x27   : > { %s505_s29 = sshll.u32 %s1221_s28, 4 }
  0x28   : > { %s155_s30 = ssub.s32 32, %s505_s29 }
  0x29   : > { %s156_s7 = sshll.u32 %s155_s30, 4 }
  0x2a   : > { %157 = vsyncadd %s888_s8, %s156_s7  ;;  %p891_p0 = scmp.ne.s32.totalorder %s505_s29, 0  ;;  %s507_s0 = sshll.u32 %s756_s15, 5 }
  0x2b   : > { %s163_s12 = scalar_lea.hbm %s1172_s5, %s507_s0  ;;  %s899_s4 = sshll.u32 %s147_s9, 4  ;;  %s169_s4 = int_to_ptr.vmem [resolvable:$true] %s899_s4 }
  0x2c   : > { %s166_s17 = sshll.u32 %s163_s12, 4  ;;  %s509_s19 = sshll.u32 %s1221_s28, 8  ;;  %s902_s17 = int_to_ptr.hbm [resolvable:$true] %s166_s17 }
  0x2d   : > { %s626_s20 = sshra.s32 %s902_s17, 4  ;;  %s628_s25 = sshrl.u32 %s509_s19, 4  ;;  %s627_s20 = int_to_ptr.hbm [resolvable:$true] %s626_s20 }
  0x2e   : > { %s633_s26 = scalar_lea.hbm %s627_s20, %s628_s25  ;;  %s637_s30 = scalar_lea.hbm %s1172_s5, 48 }
  0x2f   : > { %p634_p1 = scmp.ne.s32.totalorder %s627_s20, %s633_s26  ;;  %p639_p4 = scmp.lt.s32.totalorder %s637_s30, %s633_s26 }
  0x31   : > { %p635_p2 = pnand %p634_p1, %p891_p0 }
  0x33   : > { %p636_p3 = pneg %p635_p2 }
  0x35   : > { %p641_p5 = pnand %p639_p4, %p636_p3 }
  0x37   : > { %644 = shalt.err (!%p641_p5)
}
  0x38   : > { %s645_s7 = sshra.s32 %s169_s4, 4  ;;  %s766_s0 = smov [#allocation8]   ;;  %s646_s7 = int_to_ptr.vmem [resolvable:$true] %s645_s7 }
  0x39   : > { %s652_s9 = scalar_lea.vmem %s646_s7, %s628_s25  ;;  %s656_s11 = scalar_lea.vmem %s766_s0, 64 }
  0x3a   : > { %p653_p6 = scmp.ne.s32.totalorder %s646_s7, %s652_s9  ;;  %p658_p13 = scmp.lt.s32.totalorder %s656_s11, %s652_s9 }
  0x3c   : > { %p654_p7 = pnand %p653_p6, %p891_p0 }
  0x3e   : > { %p655_p10 = pneg %p654_p7 }
  0x40   : > { %p660_p1 = pnand %p658_p13, %p655_p10 }
  0x42   : > { %663 = shalt.err (!%p660_p1)
}
  0x43   : > { %s767_s1 = smov 128   ;;  %s768_s12 = smov 8  }
  0x44   : > { %174 = dma.hbm_to_vmem [thread:$0]  (%p891_p0), %s902_s17, %s509_s19, %s169_s4, %s888_s8, %s767_s1, %s767_s1, %s768_s12  }
  0x45 PF: > { %p483_p2 = scmp.ge.s32.totalorder %s760_s16, 1  ;;  %p176_p3 = scmp.lt.s32.totalorder %s760_s16, 3 }
  0x47   : > { %p177_p4 = pnand %p483_p2, %p176_p3 }
  0x48   : > { %s928_s20 = sand.u32 (!%p177_p4), 1, %s744_s13  }
  0x49   : > { %180 = sbr.rel (%p177_p4) target bundleno = 150 (0x96), region = 24  ;;  %s484_s25 = sshll.u32 (!%p177_p4), %s928_s20, 5 }
  0x4a   : > { %s183_s10 = scalar_lea.sflag (!%p177_p4), [#allocation9], %s928_s20  ;;  %s934_s28 = scalar_lea.vmem (!%p177_p4), [#allocation8], %s484_s25 }
  0x4e   : > { %731 = dma.done.wait (%p865_p8), %s183_s10, 512  }
  0x4f   : > { %733 = vsyncadd (%p865_p8), %s183_s10, 4294966784  ;;  %s941_s8 = sshll.u32 %s752_s14, 1  ;;  %v222_v0 = vlaneseq  ;;  %s945_s17 = sld [smem:[#allocation7]]  ;;  %v275_v19 = vld [vmem:[%s934_s28] sm:$0xff]  ;;  %v276_v25 = vld [vmem:[%s934_s28 + $0x8] sm:$0xff] }
  0x50   : > { %p234_p0 = scmp.lt.s32.totalorder %s941_s8, 2  ;;  %s290_s30 = sadd.s32 1, %s941_s8  ;;  %v489_v40 = vld [vmem:[%s934_s28 + $0x10] sm:$0xff]  ;;  %v490_v42 = vld [vmem:[%s934_s28 + $0x18] sm:$0xff] }
  0x51   : > { %v948_v1 = vand.u32 127, %v222_v0  ;;  %v950_v2 = vshrl.u32 %v222_v0, 7  ;;  %p291_p8 = scmp.lt.s32.totalorder %s290_s30, 2 }
  0x52   : > { %s235_s4 = scalar_select %p234_p0, %s941_s8, 2 }
  0x53   : > { %v962_v6 = vadd.s32 8, %v950_v2  ;;  %s1223_s30 = smov (!%p291_p8, %s290_s30), 2 }
  0x54   : > { %s487_s19 = sshll.u32 %s235_s4, 1  ;;  %s488_s12 = sshll.u32 %s1223_s30, 1 }
  0x55   : > { %s237_s26 = sld [smem:[#allocation3 + %s487_s19]]  ;;  %s244_s27 = sadd.s32 1, %s487_s19  ;;  %v285_v20 = vstv %s945_s17 }
  0x56   : > { %s238_s29 = sld [smem:[#allocation4 + %s487_s19]]  ;;  %s301_s4 = sadd.s32 1, %s488_s12 }
  0x57   : > { %s245_s7 = sld [smem:[#allocation3 + %s244_s27]] }
  0x58   : > { %s246_s21 = sld [smem:[#allocation4 + %s244_s27]] }
  0x59   : > { %s253_s9 = sld [smem:[#allocation5 + %s487_s19]] }
  0x5a   : > { %s254_s0 = sld [smem:[#allocation6 + %s487_s19]] }
  0x5b   : > { %v239_v3 = vstv %s237_s26  ;;  %s952_s11 = sld [smem:[#allocation5 + %s244_s27]] }
  0x5c   : > { %vm955_vm0 = vcmp.ge.s32.totalorder %v948_v1, %v239_v3  ;;  %v241_v5 = vstv %s238_s29  ;;  %s959_s1 = sld [smem:[#allocation6 + %s244_s27]] }
  0x5d   : > { %vm965_vm1 = vcmp.lt.s32.totalorder %v948_v1, %v241_v5  ;;  %v247_v8 = vstv %s245_s7  ;;  %s294_s10 = sld [smem:[#allocation3 + %s488_s12]] }
  0x5e   : > { %vm243_vm2 = vmand %vm955_vm0, %vm965_vm1  ;;  %vm248_vm3 = vcmp.ge.s32.totalorder %v948_v1, %v247_v8  ;;  %v249_v9 = vstv %s246_s21  ;;  %s295_s19 = sld [smem:[#allocation4 + %s488_s12]]  ;;  %s1041_s21 = scalar_lea.vmem [#allocation11], %s484_s25 }
  0x5f   : > { %vm250_vm4 = vcmp.lt.s32.totalorder %v948_v1, %v249_v9  ;;  %v255_v10 = vstv %s253_s9  ;;  %s302_s26 = sld [smem:[#allocation3 + %s301_s4]]  ;;  %s349_s25 = scalar_lea.sflag [#allocation10], %s928_s20 }
  0x60   : > { %vm251_vm5 = vmand %vm248_vm3, %vm250_vm4  ;;  %vm976_vm6 = vcmp.ge.s32.totalorder %v950_v2, %v255_v10  ;;  %v258_v12 = vstv %s254_s0  ;;  %vm981_vm7 = vcmp.ge.s32.totalorder %v962_v6, %v255_v10  ;;  %s303_s27 = sld [smem:[#allocation4 + %s301_s4]]  ;;  %s358_s9 = ssub.s32 (%p869_p9), 3, %s941_s8 }
  0x61   : > { %vm985_vm8 = vmor %vm243_vm2, %vm251_vm5  ;;  %vm990_vm9 = vcmp.lt.s32.totalorder %v950_v2, %v258_v12  ;;  %v265_v16 = vstv %s952_s11  ;;  %vm996_vm10 = vcmp.lt.s32.totalorder %v962_v6, %v258_v12  ;;  %s310_s29 = sld [smem:[#allocation5 + %s488_s12]]  ;;  %p359_p5 = scmp.lt.s32.totalorder (%p869_p9), %s358_s9, 2 }
  0x62   : > { %vm261_vm11 = vmand %vm976_vm6, %vm990_vm9  ;;  %vm266_vm12 = vcmp.ge.s32.totalorder %v950_v2, %v265_v16  ;;  %v268_v18 = vstv %s959_s1  ;;  %vm1014_vm0 = vcmp.ge.s32.totalorder %v962_v6, %v265_v16  ;;  %s1023_s30 = sld [smem:[#allocation6 + %s488_s12]] }
  0x63   : > { %vm269_vm13 = vcmp.lt.s32.totalorder %v950_v2, %v268_v18  ;;  %vm262_vm14 = vmand %vm981_vm7, %vm996_vm10  ;;  %vm1019_vm1 = vcmp.lt.s32.totalorder %v962_v6, %v268_v18  ;;  %v296_v23 = vstv %s294_s10  ;;  %s1027_s7 = sld [smem:[#allocation5 + %s301_s4]] }
  0x64   : > { %vm271_vm15 = vmand %vm266_vm12, %vm269_vm13  ;;  %vm1035_vm5 = vcmp.ge.s32.totalorder %v948_v1, %v296_v23  ;;  %v298_v27 = vstv %s295_s19  ;;  %s321_s17 = sld [smem:[#allocation6 + %s301_s4]] }
  0x65   : > { %vm273_vm2 = vmor %vm261_vm11, %vm271_vm15  ;;  %vm1050_vm9 = vcmp.lt.s32.totalorder %v948_v1, %v298_v27  ;;  %v304_v29 = vstv %s302_s26 }
  0x66   : > { %vm283_vm3 = vmor %vm985_vm8, %vm273_vm2  ;;  %vm305_vm12 = vcmp.ge.s32.totalorder %v948_v1, %v304_v29  ;;  %v306_v30 = vstv %s303_s27 }
  0x67   : > { %v286_v24 = vsel %vm283_vm3, %v285_v20, %v275_v19  ;;  %vm272_vm4 = vmand %vm1014_vm0, %vm1019_vm1  ;;  %vm307_vm10 = vcmp.lt.s32.totalorder %v948_v1, %v306_v30  ;;  %v312_v32 = vstv %s310_s29 }
  0x68   : > { %288 = vst [vmem:[%s1041_s21] sm:$0xff] %v286_v24  ;;  %vm274_vm6 = vmor %vm262_vm14, %vm272_vm4  ;;  %vm1064_vm14 = vcmp.ge.s32.totalorder %v950_v2, %v312_v32  ;;  %v315_v34 = vstv %s1023_s30 }
  0x69   : > { %vm284_vm11 = vmor %vm985_vm8, %vm274_vm6  ;;  %vm1070_vm8 = vcmp.ge.s32.totalorder %v962_v6, %v312_v32  ;;  %vm316_vm0 = vcmp.lt.s32.totalorder %v950_v2, %v315_v34  ;;  %v322_v37 = vstv %s1027_s7  ;;  %vm1081_vm1 = vcmp.lt.s32.totalorder %v962_v6, %v315_v34 }
  0x6a   : > { %v287_v31 = vsel %vm284_vm11, %v285_v20, %v276_v25  ;;  %vm300_vm7 = vmand %vm1035_vm5, %vm1050_vm9  ;;  %vm323_vm3 = vcmp.ge.s32.totalorder %v950_v2, %v322_v37  ;;  %v325_v39 = vstv %s321_s17  ;;  %vm324_vm9 = vcmp.ge.s32.totalorder %v962_v6, %v322_v37 }
  0x6b   : > { %289 = vst [vmem:[%s1041_s21 + $0x8] sm:$0xff] %v287_v31  ;;  %vm308_vm13 = vmand %vm305_vm12, %vm307_vm10  ;;  %vm326_vm4 = vcmp.lt.s32.totalorder %v950_v2, %v325_v39  ;;  %vm327_vm11 = vcmp.lt.s32.totalorder %v962_v6, %v325_v39 }
  0x6c   : > { %vm1074_vm15 = vmor %vm300_vm7, %vm308_vm13 }
  0x6d   : > { %vm318_vm2 = vmand %vm1064_vm14, %vm316_vm0 }
  0x6e   : > { %vm319_vm5 = vmand %vm1070_vm8, %vm1081_vm1 }
  0x6f   : > { %vm328_vm6 = vmand %vm323_vm3, %vm326_vm4 }
  0x70   : > { %vm330_vm12 = vmor %vm318_vm2, %vm328_vm6 }
  0x71   : > { %vm341_vm7 = vmor %vm1074_vm15, %vm330_vm12 }
  0x72   : > { %v343_v41 = vsel %vm341_vm7, %v285_v20, %v489_v40  ;;  %vm329_vm10 = vmand %vm324_vm9, %vm327_vm11  ;;  %355 = sbr.rel (!%p869_p9) target bundleno = 150 (0x96), region = 32 }
  0x73   : > { %491 = vst [vmem:[%s1041_s21 + $0x10] sm:$0xff] %v343_v41  ;;  %vm331_vm13 = vmor %vm319_vm5, %vm329_vm10 }
  0x74   : > { %vm342_vm14 = vmor %vm1074_vm15, %vm331_vm13 }
  0x75   : > { %v344_v43 = vsel %vm342_vm14, %v285_v20, %v490_v42 }
  0x76   : > { %492 = vst [vmem:[%s1041_s21 + $0x18] sm:$0xff] %v344_v43 }
  0x77   : > { %s1225_s9 = smov (!%p359_p5, %s358_s9), 2 }
  0x78   : > { %s510_s0 = sshll.u32 %s1225_s9, 4 }
  0x79   : > { %s363_s28 = ssub.s32 32, %s510_s0 }
  0x7a   : > { %s364_s11 = sshll.u32 %s363_s28, 4 }
  0x7b   : > { %365 = vsyncadd %s349_s25, %s364_s11  ;;  %p1112_p6 = scmp.ne.s32.totalorder %s510_s0, 0  ;;  %s512_s22 = sshll.u32 %s752_s14, 5 }
  0x7c   : > { %s371_s10 = scalar_lea.hbm %s1173_s6, %s512_s22  ;;  %s374_s4 = sshll.u32 %s1041_s21, 4  ;;  %s1121_s4 = int_to_ptr.vmem [resolvable:$true] %s374_s4 }
  0x7d   : > { %s376_s19 = sshll.u32 %s371_s10, 4  ;;  %s514_s26 = sshll.u32 %s1225_s9, 8  ;;  %s1123_s19 = int_to_ptr.hbm [resolvable:$true] %s376_s19 }
  0x7e   : > { %s665_s27 = sshra.s32 %s1121_s4, 4  ;;  %s667_s29 = sshrl.u32 %s514_s26, 4  ;;  %s666_s27 = int_to_ptr.vmem [resolvable:$true] %s665_s27 }
  0x7f   : > { %s672_s30 = scalar_lea.vmem %s666_s27, %s667_s29  ;;  %s769_s14 = smov [#allocation11]  }
  0x80   : > { %p673_p9 = scmp.ne.s32.totalorder %s666_s27, %s672_s30  ;;  %s676_s7 = scalar_lea.vmem %s769_s14, 64 }
  0x81   : > { %p678_p13 = scmp.lt.s32.totalorder %s676_s7, %s672_s30 }
  0x82   : > { %p674_p7 = pnand %p673_p9, %p1112_p6 }
  0x84   : > { %p675_p10 = pneg %p674_p7 }
  0x86   : > { %p680_p1 = pnand %p678_p13, %p675_p10 }
  0x88   : > { %683 = shalt.err (!%p680_p1)
}
  0x89   : > { %s684_s17 = sshra.s32 %s1123_s19, 4  ;;  %s695_s11 = scalar_lea.hbm %s1173_s6, 48  ;;  %s685_s17 = int_to_ptr.hbm [resolvable:$true] %s684_s17 }
  0x8a   : > { %s691_s21 = scalar_lea.hbm %s685_s17, %s667_s29  ;;  %p696_p0 = scmp.lt.s32.totalorder %s685_s17, %s1173_s6 }
  0x8b   : > { %p692_p2 = scmp.ne.s32.totalorder %s685_s17, %s691_s21  ;;  %p697_p8 = scmp.lt.s32.totalorder %s695_s11, %s691_s21 }
  0x8d   : > { %p693_p3 = pnand %p692_p2, %p1112_p6  ;;  %p698_p5 = por %p697_p8, %p696_p0 }
  0x8f   : > { %p694_p4 = pneg %p693_p3 }
  0x91   : > { %p699_p9 = pnand %p698_p5, %p694_p4 }
  0x93   : > { %702 = shalt.err (!%p699_p9)
}
  0x94   : > { %s770_s12 = smov 128   ;;  %s771_s10 = smov 8  }
  0x95   : > { %382 = dma.vmem_to_hbm [thread:$0]  (%p1112_p6), %s1121_s4, %s514_s26, %s1123_s19, %s349_s25, %s770_s12, %s770_s12, %s771_s10  }
  0x96 PF: > { %s391_s27 = sand.u32 1, %s740_s2   ;;  %p518_p7 = pnand %p472_p12, %p876_p11 }
  0x97   : > { %s392_s29 = scalar_lea.sflag [#allocation10], %s391_s27 }
  0x98   : > { %p519_p10 = pneg %p518_p7 }
  0x9a   : > { %735 = dma.done.wait (%p519_p10), %s392_s29, 512  }
  0x9b   : > { %737 = vsyncadd (%p519_p10), %s392_s29, 4294966784  ;;  %s46_s16 = sadd.s32 1, %s760_s16   ;;  %s1213_s2 = smov %s744_s13 }
  0x9c   : > { %p43_p13 = scmp.ge.s32.totalorder %s46_s16, 4   ;;  %s1214_s13 = smov %s748_s3 }
  0x9d   : > { %s1215_s3 = smov %s874_s23  ;;  %s1216_s14 = smov %s756_s15 }
  0x9e   : > { %s1217_s15 = smov %s1219_s18  ;;  %45 = sbr.rel (!%p43_p13) target bundleno = 18 (0x12), region = 71 }
  0xa3   :  { %398 = vsyncpa [#allocation9], 1 }
  0xa4   :  { %400 = vsyncpa [#allocation9 + $0x1], 1 }
  0xa5   :  { %401 = vsyncpa [#allocation10], 1 }
  0xa6   :  { %403 = vsyncpa [#allocation10 + $0x1], 1 }

</bundles_post_ra>
